<compile_context>
chip_gen: v7x
topology: tpu7x:2x2x1
jax: 0.10.0
libtpu: 0.0.40
codegen_flags: <defaults>
</compile_context>

<pallas_src>
import math

import jax
import jax.numpy as jnp
from jax.experimental import pallas as pl
from jax.experimental.pallas import tpu as pltpu


def _intercept_kernel(bias_ref, out_ref):
    # bias_ref: (1, L) resident in VMEM; out_ref: (TILE_ROWS, L) lane-dense block.
    out_ref[...] = jnp.broadcast_to(bias_ref[...], out_ref.shape)


def intercept_only_forward(x, bias):
    """Equivalent of InterceptOnlyModel.forward.

    x:    (B, S, d_in) -- shape source only; never read.
    bias: (d_out,)
    returns (B, S, d_out) == broadcast of bias, dtype follows bias.
    """
    B, S, _ = x.shape
    d_out = bias.shape[0]
    dtype = bias.dtype
    itemsize = jnp.dtype(dtype).itemsize
    total = B * S * d_out

    # ---- lane-dense 2-D output layout ------------------------------------
    # Present the output as (rows, L) with L a multiple of 128 lanes so the
    # writeback path uses full vector stores.  If d_out is not lane-aligned,
    # tile the bias up to L = lcm(d_out, 128) and write the flat buffer as
    # (total // L, L); otherwise fall back to last-dim = d_out (full extent,
    # always a legal BlockSpec).
    if d_out % 128 == 0:
        L = d_out
        bias_row = bias.reshape(1, L)
    else:
        L = (d_out * 128) // math.gcd(d_out, 128)  # lcm(d_out, 128)
        if total % L == 0 and L * itemsize <= (2 << 20):
            bias_row = jnp.tile(bias, L // d_out).reshape(1, L)
        else:
            # Correctness fallback: narrow / ragged d_out -> masked stores,
            # but rows are still tiled in big chunks.
            L = d_out
            bias_row = bias.reshape(1, L)
    rows = total // L

    # ---- row tiling --------------------------------------------------------
    # Big row tiles amortize per-grid-step overhead; cap per-tile bytes at
    # 4 MiB (8 MiB double-buffered) so tiling is safe under v7x's smaller
    # scoped VMEM regardless of L.
    sublane = max(8, 32 // itemsize)          # 8 (f32), 16 (bf16), 32 (i8)
    max_tile_bytes = 4 << 20
    cap = max(sublane, (max_tile_bytes // max(1, L * itemsize)) // sublane * sublane)
    tile_rows = min(2048, cap)
    if rows <= tile_rows:
        tile_rows = rows                      # single full-extent block (always legal)
    grid_rows = pl.cdiv(rows, tile_rows)

    out2d = pl.pallas_call(
        _intercept_kernel,
        out_shape=jax.ShapeDtypeStruct((rows, L), dtype),
        grid=(grid_rows,),
        in_specs=[
            # Constant index_map: same tiny bias block every step (VMEM-resident).
            pl.BlockSpec((1, L), lambda i: (0, 0)),
        ],
        out_specs=pl.BlockSpec((tile_rows, L), lambda i: (i, 0)),
        compiler_params=pltpu.CompilerParams(
            dimension_semantics=("parallel",),
            vmem_limit_bytes=32 * 1024 * 1024,
        ),
        cost_estimate=pl.CostEstimate(
            flops=0, transcendentals=0, bytes_accessed=total * itemsize),
    )(bias_row)

    return out2d.reshape(B, S, d_out)


if __name__ == "__main__":
    key = jax.random.PRNGKey(0)

    def check(B, S, d_in, d_out, k, dtype=jnp.float32):
        kx, kb = jax.random.split(k)
        x = jax.random.normal(kx, (B, S, d_in), dtype=jnp.float32)
        bias = jax.random.normal(kb, (d_out,)).astype(dtype)
        out = jax.block_until_ready(intercept_only_forward(x, bias))
        ref = jnp.broadcast_to(bias[None, None, :], (B, S, d_out))
        assert out.shape == (B, S, d_out)
        assert out.dtype == bias.dtype
        assert jnp.array_equal(out, ref)

    k0, k1, k2, k3, k4 = jax.random.split(key, 5)

    # Module-sized example: d_out=32 -> retiled to lane-dense L=128.
    check(2, 8, 16, 32, k0)

    # Zero bias (the actual nn.Parameter init) on the same small shapes.
    x_z = jax.random.normal(k1, (2, 8, 16), dtype=jnp.float32)
    bias_zero = jnp.zeros((32,), dtype=jnp.float32)
    out_zero = jax.block_until_ready(intercept_only_forward(x_z, bias_zero))
    assert jnp.array_equal(out_zero, jnp.zeros((2, 8, 32), dtype=jnp.float32))

    # Multi-tile row grid (rows=8192 > tile_rows cap), lane-dense d_out=128.
    check(8, 1024, 8, 128, k2)

    # Non-lane-dense fallback path (total not divisible by lcm(d_out, 128)).
    check(2, 7, 8, 100, k3)

    # bf16 bias (output dtype follows bias).
    check(2, 8, 16, 32, k4, dtype=jnp.bfloat16)

    print("KERNEL_OK")
</pallas_src>

<mosaic_0001>
module attributes {stable_mosaic.version = 11 : i64} {
  func.func @_intercept_kernel(%arg0: i32, %arg1: memref<1x128xf32, #tpu.memory_space<vmem>>, %arg2: memref<4x128xf32, #tpu.memory_space<vmem>>) attributes {dimension_semantics = [#tpu.dimension_semantics<parallel>], iteration_bounds = array<i64: 1>, scalar_prefetch = 0 : i64, scratch_operands = 0 : i64, tpu.core_type = #tpu.core_type<tc>, window_params = [{pipeline_mode = #tpu.pipeline_mode<synchronous>, transform_indices = @transform_0, window_bounds = array<i64: 1, 128>}, {transform_indices = @transform_1, window_bounds = array<i64: 4, 128>}]} {
    %c0 = arith.constant 0 : index
    %c0_0 = arith.constant 0 : index
    %0 = vector.load %arg1[%c0, %c0_0] : memref<1x128xf32, #tpu.memory_space<vmem>>, vector<1x128xf32>
    %1 = vector.shape_cast %0 : vector<1x128xf32> to vector<1x128xf32>
    %2 = vector.broadcast %1 : vector<1x128xf32> to vector<4x128xf32>
    %c0_1 = arith.constant 0 : index
    %c0_2 = arith.constant 0 : index
    %3 = vector.load %arg2[%c0_1, %c0_2] : memref<4x128xf32, #tpu.memory_space<vmem>>, vector<4x128xf32>
    tpu.vector_store %arg2[%c0_1, %c0_2], %2 {strides = array<i32>} : memref<4x128xf32, #tpu.memory_space<vmem>>, vector<4x128xf32>,
    return
  }
  func.func @transform_0(%arg0: i32) -> (i32, i32) {
    %c0_i32 = arith.constant 0 : i32
    %c0_i32_0 = arith.constant 0 : i32
    %c0_i32_1 = arith.constant 0 : i32
    return %c0_i32, %c0_i32_0 : i32, i32
  }
  func.func @transform_1(%arg0: i32) -> (i32, i32) {
    %c0_i32 = arith.constant 0 : i32
    %c0_i32_0 = arith.constant 0 : i32
    return %arg0, %c0_i32 : i32, i32
  }
}

</mosaic_0001>

<bundles_post_ra>
// kernel: tpu_custom_call.1
= control target key start
LH: loop header
LB: loop body
LE: loop exit
PB: predicated region body
PF: predicated region fallthrough
CT: control target
= control target key end

     0   :  { %6 = vsyncpa [#allocation3], 0  ;;  %s131_s0 = inlined_call_operand.hbm [shape: f32[1,128], index: 0, kind: input, shape index: {}]   ;;  %s132_s1 = inlined_call_operand.hbm [shape: f32[4,128], index: 1, kind: output, shape index: {}]  }
   0x1   :  { %7 = vsyncpa [#allocation4], 0  ;;  %s95_s6 = smov [#allocation2]   ;;  %s47_s10 = scalar_lea.hbm %s131_s0, 16 }
   0x2   :  { %s14_s7 = sshll.u32 %s95_s6, 4  ;;  %p48_p0 = scmp.ne.s32.totalorder %s131_s0, %s47_s10  ;;  %s15_s7 = int_to_ptr.vmem [resolvable:$true] %s14_s7 }
   0x3   :  { %p51_p1 = scmp.lt.u32.totalorder %s47_s10, %s131_s0 }
   0x5   :  { %p53_p2 = pnand %p51_p1, %p48_p0 }
   0x7   :  { %56 = shalt.err (!%p53_p2)
}
   0x8   :  { %s57_s15 = scalar_lea.vmem %s15_s7, 16  ;;  %s61_s16 = scalar_lea.vmem %s15_s7, 32 }
   0x9   :  { %p58_p3 = scmp.ne.s32.totalorder %s15_s7, %s57_s15  ;;  %p62_p4 = scmp.lt.s32.totalorder %s15_s7, %s15_s7 }
   0xa   :  { %p63_p5 = scmp.lt.s32.totalorder %s61_s16, %s57_s15 }
   0xc   :  { %p64_p6 = por %p63_p5, %p62_p4 }
   0xe   :  { %p65_p7 = pnand %p64_p6, %p58_p3 }
  0x10   :  { %68 = shalt.err (!%p65_p7)
}
  0x11   :  { %17 = dma.hbm_to_vmem [thread:$0]  %s131_s0, 16, %s15_s7, [#allocation3]  }
  0x12   :  { %91 = dma.done.wait [#allocation3], 16  }
  0x13   :  { %92 = vsyncadd [#allocation3], 4294967280  ;;  %s96_s19 = smov [#allocation5]   ;;  %v44_v0 = vld [vmem:[#allocation2] ss:$0 sm:$0xff] }
  0x14   :  { %s35_s20 = sshll.u32 %s96_s19, 4  ;;  %28 = vst [vmem:[#allocation5] sm:$0xf] %v44_v0  ;;  %s36_s20 = int_to_ptr.vmem [resolvable:$true] %s35_s20 }
  0x15   :  { %s69_s21 = scalar_lea.vmem %s36_s20, 64  ;;  %p74_p9 = scmp.lt.s32.totalorder %s36_s20, %s36_s20 }
  0x16   :  { %p70_p8 = scmp.ne.s32.totalorder %s36_s20, %s69_s21  ;;  %p75_p10 = scmp.lt.s32.totalorder %s69_s21, %s69_s21 }
  0x18   :  { %p76_p11 = por %p75_p10, %p74_p9 }
  0x1a   :  { %p77_p12 = pnand %p76_p11, %p70_p8 }
  0x1c   :  { %80 = shalt.err (!%p77_p12)
}
  0x1d   :  { %s81_s24 = scalar_lea.hbm %s132_s1, 64 }
  0x1e   :  { %p82_p13 = scmp.ne.s32.totalorder %s132_s1, %s81_s24  ;;  %p85_p0 = scmp.lt.u32.totalorder %s81_s24, %s132_s1 }
  0x20   :  { %p87_p1 = pnand %p85_p0, %p82_p13 }
  0x22   :  { %90 = shalt.err (!%p87_p1)
}
  0x23   :  { %38 = dma.vmem_to_hbm [thread:$0]  %s36_s20, 64, %s132_s1, [#allocation4]  }
  0x24   :  { %93 = dma.done.wait [#allocation4], 64  }
  0x25   :  { %94 = vsyncadd [#allocation4], 4294967232 }
  0x26   :  { %42 = vsyncpa [#allocation3], 1 }
  0x27   :  { %43 = vsyncpa [#allocation4], 1 }

</bundles_post_ra>
